<compile_context>
chip_gen: v6e
topology: v6e:2x2x1
jax: 0.10.0
libtpu: 0.0.40
codegen_flags: <defaults>
</compile_context>

<pallas_src>
import jax
import jax.numpy as jnp
import numpy as np
from jax.experimental import pallas as pl
from jax.experimental.pallas import tpu as pltpu


def _round_up(x: int, m: int) -> int:
    return ((x + m - 1) // m) * m


def _pad128(x: int) -> int:
    return _round_up(x, 128)


# ---------------------------------------------------------------------------
# Kernel
# ---------------------------------------------------------------------------
def qnetwork_kernel(s_ref, a_ref,
                    w1s_ref, w1a_ref, b1_ref,
                    w2_ref, b2_ref,
                    w3_ref, b3_ref,
                    w4_ref, b4_ref,
                    o_ref):
    """Fused 4-layer MLP: relu(l1) -> relu(l2) -> relu(l3) -> l4 (scalar out).

    Matmul operands use the weight dtype (bf16 by default) with f32
    accumulation.  Bias-add / ReLU run in the bias dtype (bf16 on v6e/v7x,
    f32 on v5e).  The final reduce is always f32.
    """
    dot_dtype = w1s_ref.dtype
    ew_dtype = b1_ref.dtype

    s = s_ref[...].astype(dot_dtype)                      # (tB, S)
    a = a_ref[...].astype(dot_dtype)                      # (tB, A)

    # Layer 1: fused concat via split W1 -> state @ W1s + action @ W1a.
    h = (jnp.dot(s, w1s_ref[...], preferred_element_type=jnp.float32)
         + jnp.dot(a, w1a_ref[...], preferred_element_type=jnp.float32))
    h = jnp.maximum(h.astype(ew_dtype) + b1_ref[...], 0.0).astype(dot_dtype)

    # Layer 2
    h = jnp.dot(h, w2_ref[...], preferred_element_type=jnp.float32)
    h = jnp.maximum(h.astype(ew_dtype) + b2_ref[...], 0.0).astype(dot_dtype)

    # Layer 3
    h = jnp.dot(h, w3_ref[...], preferred_element_type=jnp.float32)
    h = jnp.maximum(h.astype(ew_dtype) + b3_ref[...], 0.0)

    # Layer 4: width-1 output -> VPU multiply + cross-lane reduce (f32).
    q = (jnp.sum(h.astype(jnp.float32) * w4_ref[...], axis=-1, keepdims=True)
         + b4_ref[...])                                   # (tB, 1)
    o_ref[...] = q.astype(o_ref.dtype)


# ---------------------------------------------------------------------------
# Tiling / VMEM planning
# ---------------------------------------------------------------------------
def _vmem_budget_bytes() -> int:
    try:
        phys = int(pltpu.get_tpu_info().vmem_capacity_bytes)
    except Exception:
        phys = 64 * 1024 * 1024            # conservative: v7x per-core VMEM
    # ~48 MiB on v7x (64 MiB physical), up to ~96 MiB on v5e/v6e (128 MiB).
    return min(phys * 3 // 4, 100 * 1024 * 1024)


def _plan_tiling(B, S, A, Hp, prepared_params, max_tile_b):
    budget = _vmem_budget_bytes()
    # Weight/bias blocks are single-buffered (pl.Buffered(1)); estimate with
    # (8, 128) VMEM tile padding.
    w_bytes = sum(_round_up(p.shape[0], 8) * _pad128(p.shape[1]) * p.dtype.itemsize
                  for p in prepared_params)
    # Per batch row: state/action/output tiles (f32, double-buffered, lane
    # padded) + ~3 f32 copies of the (tile_b, Hp) intermediate.
    per_row = 2 * 4 * (_pad128(S) + _pad128(A) + _pad128(1)) + 3 * 4 * Hp
    avail = budget - w_bytes - (8 << 20)
    cap = max(16, min(max_tile_b, (max(avail, 16 * per_row) // per_row) // 16 * 16))

    if B > cap:
        tile_b = cap
    elif B >= 2048:
        # Large enough to amortize duplicated per-core weight fetch: give the
        # v7x megacore ("parallel" grid axis) at least two steps to shard.
        tile_b = min(cap, _round_up((B + 1) // 2, 16))
    else:
        tile_b = _round_up(B, 16)

    est = w_bytes + tile_b * per_row
    vmem_limit = int(min(budget, max(32 << 20, 2 * est)))
    return tile_b, vmem_limit


# ---------------------------------------------------------------------------
# Wrapper
# ---------------------------------------------------------------------------
def qnetwork_forward(state, action, prepared_params, *, max_tile_b=2048):
    """state: (B, S), action: (B, A)  ->  q: (B, 1) float32."""
    (w1s, w1a, b1, w2, b2, w3, b3, w4, b4) = prepared_params
    B, S = state.shape
    A = action.shape[1]
    Hp = w2.shape[0]                        # padded hidden dim (multiple of 128)

    tile_b, vmem_limit = _plan_tiling(B, S, A, Hp, prepared_params, max_tile_b)
    grid = (pl.cdiv(B, tile_b),)

    batch = lambda i: (i, 0)                # activations tiled along batch
    full = lambda i: (0, 0)                 # weights: grid-invariant, resident
    wspec = lambda shape: pl.BlockSpec(shape, full, pipeline_mode=pl.Buffered(1))

    in_specs = [
        pl.BlockSpec((tile_b, S), batch),   # state   (double-buffered)
        pl.BlockSpec((tile_b, A), batch),   # action  (double-buffered)
        wspec((S, Hp)),                     # w1_s    (single-buffered)
        wspec((A, Hp)),                     # w1_a
        wspec((1, Hp)),                     # b1
        wspec((Hp, Hp)),                    # w2
        wspec((1, Hp)),                     # b2
        wspec((Hp, Hp)),                    # w3
        wspec((1, Hp)),                     # b3
        wspec((1, Hp)),                     # w4 (as a row)
        wspec((1, 1)),                      # b4
    ]
    out_specs = pl.BlockSpec((tile_b, 1), batch)

    weight_bytes = int(sum(int(np.prod(p.shape)) * p.dtype.itemsize
                           for p in prepared_params))
    cost = pl.CostEstimate(
        flops=int(2 * B * ((S + A) * Hp + 2 * Hp * Hp + Hp)),
        transcendentals=0,
        bytes_accessed=int(4 * B * (S + A + 1) + weight_bytes),
    )

    return pl.pallas_call(
        qnetwork_kernel,
        out_shape=jax.ShapeDtypeStruct((B, 1), jnp.float32),
        grid=grid,
        in_specs=in_specs,
        out_specs=out_specs,
        compiler_params=pltpu.CompilerParams(
            dimension_semantics=("parallel",),   # v7x: shard grid steps across TCs
            vmem_limit_bytes=vmem_limit,
        ),
        cost_estimate=cost,
    )(state, action, w1s, w1a, b1, w2, b2, w3, b3, w4, b4)


# ---------------------------------------------------------------------------
# Parameters
# ---------------------------------------------------------------------------
def init_params(key, state_dim, action_dim, hidden_dim):
    """PyTorch-default-style init; weights stored (in, out) so y = x @ W + b."""
    def linear(key, fan_in, fan_out, w_scale=None):
        kw, kb = jax.random.split(key)
        bound = 1.0 / np.sqrt(fan_in) if w_scale is None else w_scale
        w = jax.random.uniform(kw, (fan_in, fan_out), jnp.float32, -bound, bound)
        b = jax.random.uniform(kb, (1, fan_out), jnp.float32, -bound, bound)
        return w, b

    k1, k2, k3, k4 = jax.random.split(key, 4)
    in_dim = state_dim + action_dim
    w1, b1 = linear(k1, in_dim, hidden_dim)
    w2, b2 = linear(k2, hidden_dim, hidden_dim)
    w3, b3 = linear(k3, hidden_dim, hidden_dim)
    w4, b4 = linear(k4, hidden_dim, 1, w_scale=3e-3)   # linear_weights_init
    return (w1, b1, w2, b2, w3, b3, w4, b4)


def prepare_params(params, state_dim, *, compute_dtype=jnp.bfloat16, bias_dtype=None):
    """Split W1 (fused concat), zero-pad the hidden dim to a multiple of 128
    (numerically exact: ReLU(0)=0 and padded weights/biases are 0), lay W4 out
    as a (1, H) f32 row, cast matmul weights to compute_dtype and biases to
    bias_dtype (defaults to compute_dtype; use jnp.float32 on v5e)."""
    (w1, b1, w2, b2, w3, b3, w4, b4) = params
    if bias_dtype is None:
        bias_dtype = compute_dtype
    _, H = w1.shape
    Hp = _round_up(H, 128)
    ph = Hp - H

    pad_out = lambda m: jnp.pad(m, ((0, 0), (0, ph)))
    pad_in = lambda m: jnp.pad(m, ((0, ph), (0, 0)))

    w1p = pad_out(w1)
    w1s = w1p[:state_dim, :]
    w1a = w1p[state_dim:, :]
    w2p = pad_out(pad_in(w2))
    w3p = pad_out(pad_in(w3))
    b1p, b2p, b3p = pad_out(b1), pad_out(b2), pad_out(b3)
    w4row = pad_in(w4).T                                   # (1, Hp)

    cd, bd = compute_dtype, bias_dtype
    return (w1s.astype(cd), w1a.astype(cd), b1p.astype(bd),
            w2p.astype(cd), b2p.astype(bd),
            w3p.astype(cd), b3p.astype(bd),
            w4row.astype(jnp.float32), b4.astype(jnp.float32))


def reference_forward(state, action, params):
    (w1, b1, w2, b2, w3, b3, w4, b4) = params
    x = jnp.concatenate([state, action], axis=1)
    h = jax.nn.relu(x @ w1 + b1)
    h = jax.nn.relu(h @ w2 + b2)
    h = jax.nn.relu(h @ w3 + b3)
    return h @ w4 + b4


# ---------------------------------------------------------------------------
# Demo / correctness check
# ---------------------------------------------------------------------------
if __name__ == "__main__":
    state_dim, action_dim, hidden_dim = 17, 6, 32

    key = jax.random.PRNGKey(0)
    k_params, k_state, k_action = jax.random.split(key, 3)
    params = init_params(k_params, state_dim, action_dim, hidden_dim)

    # Case 1: f32 matmul/elementwise path (exact vs reference), B multiple of 16.
    B = 16
    state = jax.random.normal(k_state, (B, state_dim), jnp.float32)
    action = jax.random.normal(k_action, (B, action_dim), jnp.float32)
    q_ref = reference_forward(state, action, params)

    prep_f32 = prepare_params(params, state_dim,
                              compute_dtype=jnp.float32, bias_dtype=jnp.float32)
    q = jax.block_until_ready(qnetwork_forward(state, action, prep_f32))
    assert q.shape == (B, 1)
    np.testing.assert_allclose(np.asarray(q), np.asarray(q_ref),
                               rtol=1e-5, atol=1e-5)

    # Case 2: default bf16 matmul + bf16 bias/ReLU path (v6e/v7x fast path),
    # ragged batch to exercise the padded last block.
    B2 = 40
    s2 = jax.random.normal(jax.random.PRNGKey(1), (B2, state_dim), jnp.float32)
    a2 = jax.random.normal(jax.random.PRNGKey(2), (B2, action_dim), jnp.float32)
    q2_ref = reference_forward(s2, a2, params)

    prep_bf16 = prepare_params(params, state_dim)          # bf16 default
    q2 = jax.block_until_ready(qnetwork_forward(s2, a2, prep_bf16))
    assert q2.shape == (B2, 1)
    np.testing.assert_allclose(np.asarray(q2), np.asarray(q2_ref),
                               rtol=2e-2, atol=2e-2)

    print("KERNEL_OK")
</pallas_src>

<mosaic_0001>
module attributes {stable_mosaic.version = 11 : i64} {
  func.func @qnetwork_kernel(%arg0: i32, %arg1: memref<16x17xf32, #tpu.memory_space<vmem>>, %arg2: memref<16x6xf32, #tpu.memory_space<vmem>>, %arg3: memref<17x128xf32, #tpu.memory_space<vmem>>, %arg4: memref<6x128xf32, #tpu.memory_space<vmem>>, %arg5: memref<1x128xf32, #tpu.memory_space<vmem>>, %arg6: memref<128x128xf32, #tpu.memory_space<vmem>>, %arg7: memref<1x128xf32, #tpu.memory_space<vmem>>, %arg8: memref<128x128xf32, #tpu.memory_space<vmem>>, %arg9: memref<1x128xf32, #tpu.memory_space<vmem>>, %arg10: memref<1x128xf32, #tpu.memory_space<vmem>>, %arg11: memref<1x1xf32, #tpu.memory_space<vmem>>, %arg12: memref<16x1xf32, #tpu.memory_space<vmem>>) attributes {dimension_semantics = [#tpu.dimension_semantics<parallel>], iteration_bounds = array<i64: 1>, scalar_prefetch = 0 : i64, scratch_operands = 0 : i64, tpu.core_type = #tpu.core_type<tc>, window_params = [{transform_indices = @transform_0, window_bounds = array<i64: 16, 17>}, {transform_indices = @transform_1, window_bounds = array<i64: 16, 6>}, {pipeline_mode = #tpu.pipeline_mode<synchronous>, transform_indices = @transform_2, window_bounds = array<i64: 17, 128>}, {pipeline_mode = #tpu.pipeline_mode<synchronous>, transform_indices = @transform_3, window_bounds = array<i64: 6, 128>}, {pipeline_mode = #tpu.pipeline_mode<synchronous>, transform_indices = @transform_4, window_bounds = array<i64: 1, 128>}, {pipeline_mode = #tpu.pipeline_mode<synchronous>, transform_indices = @transform_5, window_bounds = array<i64: 128, 128>}, {pipeline_mode = #tpu.pipeline_mode<synchronous>, transform_indices = @transform_6, window_bounds = array<i64: 1, 128>}, {pipeline_mode = #tpu.pipeline_mode<synchronous>, transform_indices = @transform_7, window_bounds = array<i64: 128, 128>}, {pipeline_mode = #tpu.pipeline_mode<synchronous>, transform_indices = @transform_8, window_bounds = array<i64: 1, 128>}, {pipeline_mode = #tpu.pipeline_mode<synchronous>, transform_indices = @transform_9, window_bounds = array<i64: 1, 128>}, {pipeline_mode = #tpu.pipeline_mode<synchronous>, transform_indices = @transform_10, window_bounds = array<i64: 1, 1>}, {transform_indices = @transform_11, window_bounds = array<i64: 16, 1>}]} {
    %c0 = arith.constant 0 : index
    %c0_0 = arith.constant 0 : index
    %0 = vector.load %arg1[%c0, %c0_0] : memref<16x17xf32, #tpu.memory_space<vmem>>, vector<16x17xf32>
    %c0_1 = arith.constant 0 : index
    %c0_2 = arith.constant 0 : index
    %1 = vector.load %arg2[%c0_1, %c0_2] : memref<16x6xf32, #tpu.memory_space<vmem>>, vector<16x6xf32>
    %c0_3 = arith.constant 0 : index
    %c0_4 = arith.constant 0 : index
    %2 = vector.load %arg3[%c0_3, %c0_4] : memref<17x128xf32, #tpu.memory_space<vmem>>, vector<17x128xf32>
    %cst = arith.constant dense<0.000000e+00> : vector<16x128xf32>
    %3 = tpu.matmul %0, %2, %cst {dimension_numbers = #tpu.dot_dimension_numbers<[1], [0], [0], [1], [0, 0, 1, 1], [], []>} : vector<16x17xf32>, vector<17x128xf32>, vector<16x128xf32> -> vector<16x128xf32>
    %c0_5 = arith.constant 0 : index
    %c0_6 = arith.constant 0 : index
    %4 = vector.load %arg4[%c0_5, %c0_6] : memref<6x128xf32, #tpu.memory_space<vmem>>, vector<6x128xf32>
    %cst_7 = arith.constant dense<0.000000e+00> : vector<16x128xf32>
    %5 = tpu.matmul %1, %4, %cst_7 {dimension_numbers = #tpu.dot_dimension_numbers<[1], [0], [0], [1], [0, 0, 1, 1], [], []>} : vector<16x6xf32>, vector<6x128xf32>, vector<16x128xf32> -> vector<16x128xf32>
    %6 = arith.addf %3, %5 : vector<16x128xf32>
    %c0_8 = arith.constant 0 : index
    %c0_9 = arith.constant 0 : index
    %7 = vector.load %arg5[%c0_8, %c0_9] : memref<1x128xf32, #tpu.memory_space<vmem>>, vector<1x128xf32>
    %8 = vector.broadcast %7 : vector<1x128xf32> to vector<16x128xf32>
    %9 = arith.addf %6, %8 : vector<16x128xf32>
    %cst_10 = arith.constant 0.000000e+00 : f32
    %10 = vector.broadcast %cst_10 : f32 to vector<16x128xf32>
    %11 = arith.maximumf %9, %10 : vector<16x128xf32>
    %c0_11 = arith.constant 0 : index
    %c0_12 = arith.constant 0 : index
    %12 = vector.load %arg6[%c0_11, %c0_12] : memref<128x128xf32, #tpu.memory_space<vmem>>, vector<128x128xf32>
    %cst_13 = arith.constant dense<0.000000e+00> : vector<16x128xf32>
    %13 = tpu.matmul %11, %12, %cst_13 {dimension_numbers = #tpu.dot_dimension_numbers<[1], [0], [0], [1], [0, 0, 1, 1], [], []>} : vector<16x128xf32>, vector<128x128xf32>, vector<16x128xf32> -> vector<16x128xf32>
    %c0_14 = arith.constant 0 : index
    %c0_15 = arith.constant 0 : index
    %14 = vector.load %arg7[%c0_14, %c0_15] : memref<1x128xf32, #tpu.memory_space<vmem>>, vector<1x128xf32>
    %15 = vector.broadcast %14 : vector<1x128xf32> to vector<16x128xf32>
    %16 = arith.addf %13, %15 : vector<16x128xf32>
    %cst_16 = arith.constant 0.000000e+00 : f32
    %17 = vector.broadcast %cst_16 : f32 to vector<16x128xf32>
    %18 = arith.maximumf %16, %17 : vector<16x128xf32>
    %c0_17 = arith.constant 0 : index
    %c0_18 = arith.constant 0 : index
    %19 = vector.load %arg8[%c0_17, %c0_18] : memref<128x128xf32, #tpu.memory_space<vmem>>, vector<128x128xf32>
    %cst_19 = arith.constant dense<0.000000e+00> : vector<16x128xf32>
    %20 = tpu.matmul %18, %19, %cst_19 {dimension_numbers = #tpu.dot_dimension_numbers<[1], [0], [0], [1], [0, 0, 1, 1], [], []>} : vector<16x128xf32>, vector<128x128xf32>, vector<16x128xf32> -> vector<16x128xf32>
    %c0_20 = arith.constant 0 : index
    %c0_21 = arith.constant 0 : index
    %21 = vector.load %arg9[%c0_20, %c0_21] : memref<1x128xf32, #tpu.memory_space<vmem>>, vector<1x128xf32>
    %22 = vector.broadcast %21 : vector<1x128xf32> to vector<16x128xf32>
    %23 = arith.addf %20, %22 : vector<16x128xf32>
    %cst_22 = arith.constant 0.000000e+00 : f32
    %24 = vector.broadcast %cst_22 : f32 to vector<16x128xf32>
    %25 = arith.maximumf %23, %24 : vector<16x128xf32>
    %c0_23 = arith.constant 0 : index
    %c0_24 = arith.constant 0 : index
    %26 = vector.load %arg10[%c0_23, %c0_24] : memref<1x128xf32, #tpu.memory_space<vmem>>, vector<1x128xf32>
    %27 = vector.broadcast %26 : vector<1x128xf32> to vector<16x128xf32>
    %28 = arith.mulf %25, %27 : vector<16x128xf32>
    %cst_25 = arith.constant dense<0.000000e+00> : vector<16xf32>
    %29 = vector.multi_reduction <add>, %28, %cst_25 [1] : vector<16x128xf32> to vector<16xf32>
    %30 = vector.shape_cast %29 : vector<16xf32> to vector<16x1xf32>
    %c0_26 = arith.constant 0 : index
    %c0_27 = arith.constant 0 : index
    %31 = vector.load %arg11[%c0_26, %c0_27] : memref<1x1xf32, #tpu.memory_space<vmem>>, vector<1x1xf32>
    %32 = vector.broadcast %31 : vector<1x1xf32> to vector<16x1xf32>
    %33 = arith.addf %30, %32 : vector<16x1xf32>
    %c0_28 = arith.constant 0 : index
    %c0_29 = arith.constant 0 : index
    %34 = vector.load %arg12[%c0_28, %c0_29] : memref<16x1xf32, #tpu.memory_space<vmem>>, vector<16x1xf32>
    tpu.vector_store %arg12[%c0_28, %c0_29], %33 {strides = array<i32>} : memref<16x1xf32, #tpu.memory_space<vmem>>, vector<16x1xf32>,
    return
  }
  func.func @transform_0(%arg0: i32) -> (i32, i32) {
    %c0_i32 = arith.constant 0 : i32
    %c0_i32_0 = arith.constant 0 : i32
    return %arg0, %c0_i32 : i32, i32
  }
  func.func @transform_1(%arg0: i32) -> (i32, i32) {
    %c0_i32 = arith.constant 0 : i32
    %c0_i32_0 = arith.constant 0 : i32
    return %arg0, %c0_i32 : i32, i32
  }
  func.func @transform_2(%arg0: i32) -> (i32, i32) {
    %c0_i32 = arith.constant 0 : i32
    %c0_i32_0 = arith.constant 0 : i32
    %c0_i32_1 = arith.constant 0 : i32
    return %c0_i32, %c0_i32_0 : i32, i32
  }
  func.func @transform_3(%arg0: i32) -> (i32, i32) {
    %c0_i32 = arith.constant 0 : i32
    %c0_i32_0 = arith.constant 0 : i32
    %c0_i32_1 = arith.constant 0 : i32
    return %c0_i32, %c0_i32_0 : i32, i32
  }
  func.func @transform_4(%arg0: i32) -> (i32, i32) {
    %c0_i32 = arith.constant 0 : i32
    %c0_i32_0 = arith.constant 0 : i32
    %c0_i32_1 = arith.constant 0 : i32
    return %c0_i32, %c0_i32_0 : i32, i32
  }
  func.func @transform_5(%arg0: i32) -> (i32, i32) {
    %c0_i32 = arith.constant 0 : i32
    %c0_i32_0 = arith.constant 0 : i32
    %c0_i32_1 = arith.constant 0 : i32
    return %c0_i32, %c0_i32_0 : i32, i32
  }
  func.func @transform_6(%arg0: i32) -> (i32, i32) {
    %c0_i32 = arith.constant 0 : i32
    %c0_i32_0 = arith.constant 0 : i32
    %c0_i32_1 = arith.constant 0 : i32
    return %c0_i32, %c0_i32_0 : i32, i32
  }
  func.func @transform_7(%arg0: i32) -> (i32, i32) {
    %c0_i32 = arith.constant 0 : i32
    %c0_i32_0 = arith.constant 0 : i32
    %c0_i32_1 = arith.constant 0 : i32
    return %c0_i32, %c0_i32_0 : i32, i32
  }
  func.func @transform_8(%arg0: i32) -> (i32, i32) {
    %c0_i32 = arith.constant 0 : i32
    %c0_i32_0 = arith.constant 0 : i32
    %c0_i32_1 = arith.constant 0 : i32
    return %c0_i32, %c0_i32_0 : i32, i32
  }
  func.func @transform_9(%arg0: i32) -> (i32, i32) {
    %c0_i32 = arith.constant 0 : i32
    %c0_i32_0 = arith.constant 0 : i32
    %c0_i32_1 = arith.constant 0 : i32
    return %c0_i32, %c0_i32_0 : i32, i32
  }
  func.func @transform_10(%arg0: i32) -> (i32, i32) {
    %c0_i32 = arith.constant 0 : i32
    %c0_i32_0 = arith.constant 0 : i32
    %c0_i32_1 = arith.constant 0 : i32
    return %c0_i32, %c0_i32_0 : i32, i32
  }
  func.func @transform_11(%arg0: i32) -> (i32, i32) {
    %c0_i32 = arith.constant 0 : i32
    %c0_i32_0 = arith.constant 0 : i32
    return %arg0, %c0_i32 : i32, i32
  }
}

</mosaic_0001>

<bundles_post_ra>
// kernel: tpu_custom_call.1
= control target key start
LH: loop header
LB: loop body
LE: loop exit
PB: predicated region body
PF: predicated region fallthrough
CT: control target
= control target key end

     0   :  { %s861_s0 = inlined_call_operand.hbm [shape: f32[16,17], index: 0, kind: input, shape index: {}]   ;;  %s862_s1 = inlined_call_operand.vmem [shape: f32[16,6], index: 1, kind: input, shape index: {}]   ;;  %s863_s2 = inlined_call_operand.vmem [shape: f32[17,128], index: 2, kind: input, shape index: {}]   ;;  %s864_s3 = inlined_call_operand.hbm [shape: f32[6,128], index: 3, kind: input, shape index: {}]   ;;  %s865_s4 = inlined_call_operand.vmem [shape: f32[1,128], index: 4, kind: input, shape index: {}]   ;;  %s866_s5 = inlined_call_operand.hbm [shape: f32[128,128], index: 5, kind: input, shape index: {}]   ;;  %s867_s6 = inlined_call_operand.vmem [shape: f32[1,128], index: 6, kind: input, shape index: {}]   ;;  %s868_s7 = inlined_call_operand.hbm [shape: f32[128,128], index: 7, kind: input, shape index: {}]   ;;  %s869_s8 = inlined_call_operand.vmem [shape: f32[1,128], index: 8, kind: input, shape index: {}]   ;;  %s870_s9 = inlined_call_operand.vmem [shape: f32[1,128], index: 9, kind: input, shape index: {}]   ;;  %s871_s10 = inlined_call_operand.<no memory space> [shape: f32[1,1], index: 10, kind: input, shape index: {}]   ;;  %s872_s11 = inlined_call_operand.vmem [shape: f32[16,1], index: 11, kind: output, shape index: {}]  }
   0x1   :  { %v16_v0 = vstv %s871_s10 }
   0x2   :  { %17 = vst [vmem:[#allocation2] sm:$0x1] %v16_v0 }
   0x3   :  { %18 = vsyncpa [#allocation4], 0 }
   0x4   :  { %19 = vsyncpa [#allocation6], 0 }
   0x5   :  { %20 = vsyncpa [#allocation9], 0  ;;  %s747_s19 = smov [#allocation5]   ;;  %s748_s21 = smov [#allocation3]  }
   0x6   :  { %s43_s20 = sshll.u32 %s747_s19, 4  ;;  %s26_s22 = sshll.u32 %s748_s21, 4  ;;  %s44_s20 = int_to_ptr.vmem [resolvable:$true] %s43_s20  ;;  %s27_s22 = int_to_ptr.vmem [resolvable:$true] %s26_s22 }
   0x7   :  { %s669_s23 = scalar_lea.vmem %s44_s20, 128  ;;  %p674_p1 = scmp.lt.s32.totalorder %s44_s20, %s44_s20 }
   0x8   :  { %p670_p0 = scmp.ne.s32.totalorder %s44_s20, %s669_s23  ;;  %p675_p2 = scmp.lt.s32.totalorder %s669_s23, %s669_s23 }
   0xa   :  { %p676_p3 = por %p675_p2, %p674_p1 }
   0xc   :  { %p677_p4 = pnand %p676_p3, %p670_p0 }
   0xe   :  { %680 = shalt.err (!%p677_p4)
}
   0xf   :  { %46 = dma.hbm_to_vmem [thread:$0]  %s864_s3, 128, %s44_s20, [#allocation6]  }
  0x10   :  { %s689_s10 = scalar_lea.vmem %s27_s22, 256  ;;  %p694_p6 = scmp.lt.s32.totalorder %s27_s22, %s27_s22 }
  0x11   :  { %p690_p5 = scmp.ne.s32.totalorder %s27_s22, %s689_s10  ;;  %p695_p7 = scmp.lt.s32.totalorder %s689_s10, %s689_s10 }
  0x13   :  { %p696_p8 = por %p695_p7, %p694_p6 }
  0x15   :  { %p697_p9 = pnand %p696_p8, %p690_p5 }
  0x17   :  { %700 = shalt.err (!%p697_p9)
}
  0x18   :  { %s749_s26 = smov 128   ;;  %s750_s27 = smov 8  }
  0x19   :  { %32 = dma.hbm_to_vmem [thread:$0]  %s861_s0, 256, %s27_s22, [#allocation4], %s749_s26, %s749_s26, %s750_s27  }
  0x1a   :  { %s751_s30 = smov [#allocation7]   ;;  %s752_s13 = smov [#allocation8]  }
  0x1b   :  { %s54_s12 = sshll.u32 %s751_s30, 4  ;;  %s68_s14 = sshll.u32 %s752_s13, 4  ;;  %s55_s12 = int_to_ptr.vmem [resolvable:$true] %s54_s12  ;;  %s69_s14 = int_to_ptr.vmem [resolvable:$true] %s68_s14 }
  0x1c   :  { %s709_s3 = scalar_lea.vmem %s55_s12, 2048  ;;  %p714_p11 = scmp.lt.s32.totalorder %s55_s12, %s55_s12 }
  0x1d   :  { %p710_p10 = scmp.ne.s32.totalorder %s55_s12, %s709_s3  ;;  %p715_p12 = scmp.lt.s32.totalorder %s709_s3, %s709_s3 }
  0x1f   :  { %p716_p13 = por %p715_p12, %p714_p11 }
  0x21   :  { %p717_p0 = pnand %p716_p13, %p710_p10 }
  0x23   :  { %720 = shalt.err (!%p717_p0)
}
  0x24   :  { %60 = dma.hbm_to_vmem [thread:$0]  %s866_s5, 2048, %s55_s12, [#allocation6], %s749_s26, %s749_s26, %s750_s27  }
  0x25   :  { %s729_s17 = scalar_lea.vmem %s69_s14, 2048  ;;  %p734_p2 = scmp.lt.s32.totalorder %s69_s14, %s69_s14 }
  0x26   :  { %p730_p1 = scmp.ne.s32.totalorder %s69_s14, %s729_s17  ;;  %p735_p3 = scmp.lt.s32.totalorder %s729_s17, %s729_s17 }
  0x28   :  { %p736_p4 = por %p735_p3, %p734_p2 }
  0x2a   :  { %p737_p5 = pnand %p736_p4, %p730_p1 }
  0x2c   :  { %740 = shalt.err (!%p737_p5)
}
  0x2d   :  { %74 = dma.hbm_to_vmem [thread:$0]  %s868_s7, 2048, %s69_s14, [#allocation9], %s749_s26, %s749_s26, %s750_s27  }
  0x2e   :  { %741 = dma.done.wait [#allocation4], 256  }
  0x2f   :  { %742 = vsyncadd [#allocation4], 4294967040 }
  0x30   :  { %743 = dma.done.wait [#allocation6], 2176  }
  0x31   :  { %744 = vsyncadd [#allocation6], 4294965120 }
  0x32   :  { %745 = dma.done.wait [#allocation9], 2048  }
  0x33   :  { %746 = vsyncadd [#allocation9], 4294965248  ;;  %vm194_vm0 = vcmask 1040384   ;;  %vm108_vm1 = vcmask 1045504   ;;  %v99_v1 = vld [vmem:[%s863_s2 + $0x10] sm:$0x1] }
  0x34   :  { %v100_v2 = vld [vmem:[#allocation5] sm:$0x3f]  ;;  %v98_v3 = vld [vmem:[%s863_s2 + $0x8] sm:$0xff]  ;;  %vm101_vm2 = vcmask 48128   ;;  %576 = vmatprep.subr.msk.mxu1 %vm194_vm0, %v99_v1  ;;  %v95_v4 = vld [vmem:[%s862_s1] sm:$0xff]  ;;  %vm187_vm3 = vcmask 138240  }
  0x35   :  { %571 = vmatprep.subr.msk.mxu0 %vm108_vm1, %v100_v2  ;;  %v96_v5 = vld [vmem:[%s862_s1 + $0x8] sm:$0xff]  ;;  %577 = vmatpush3.msk.msra.mxu1 %vm194_vm0, %v99_v1  ;;  %v97_v6 = vld [vmem:[%s863_s2] sm:$0xff]  ;;  %v299_v8 = vld [vmem:[#allocation7 + $0x78] sm:$0xff]  ;;  %vm506_vm4 = vcmask 7168  }
  0x36   :  { %572 = vmatpush3.msk.msra.mxu0 %vm108_vm1, %v100_v2  ;;  %v93_v7 = vld [vmem:[#allocation3] sm:$0xff]  ;;  %578 = vmatprep.subr.mxu1 %v98_v3  ;;  %v94_v9 = vld [vmem:[#allocation3 + $0x8] sm:$0xff]  ;;  %v296_v12 = vld [vmem:[#allocation7 + $0x60] sm:$0xff] }
  0x37   :  { %573 = vmatprep.mubr.msk.f32.mxu0 %vm101_vm2, %v95_v4  ;;  %579 = vmatpush3.msra.mxu1 %v98_v3  ;;  %v298_v10 = vld [vmem:[#allocation7 + $0x70] sm:$0xff]  ;;  %v297_v11 = vld [vmem:[#allocation7 + $0x68] sm:$0xff]  ;;  %v295_v13 = vld [vmem:[#allocation7 + $0x58] sm:$0xff] }
  0x38   :  { %574 = vmatmul.mubr.msk.f32.vlgmr.msra.gmra.mxu0 %vm101_vm2, %v96_v5  ;;  %580 = vmatprep.subr.mxu1 %v97_v6  ;;  %v294_v14 = vld [vmem:[#allocation7 + $0x50] sm:$0xff]  ;;  %v293_v15 = vld [vmem:[#allocation7 + $0x48] sm:$0xff]  ;;  %v292_v16 = vld [vmem:[#allocation7 + $0x40] sm:$0xff] }
  0x39   :  { %582 = vmatprep.mubr.msk.f32.mxu1 %vm187_vm3, %v93_v7  ;;  %581 = vmatpush3.msra.mxu1 %v97_v6  ;;  %v291_v17 = vld [vmem:[#allocation7 + $0x38] sm:$0xff]  ;;  %v290_v18 = vld [vmem:[#allocation7 + $0x30] sm:$0xff]  ;;  %v289_v19 = vld [vmem:[#allocation7 + $0x28] sm:$0xff] }
  0x3a   :  { %585 = vmatprep.subr.mxu0 %v299_v8  ;;  %583 = vmatmul.mubr.msk.f32.vlgmr.msra.gmra.mxu1 %vm187_vm3, %v94_v9  ;;  %v288_v20 = vld [vmem:[#allocation7 + $0x20] sm:$0xff]  ;;  %v287_v21 = vld [vmem:[#allocation7 + $0x18] sm:$0xff]  ;;  %v286_v22 = vld [vmem:[#allocation7 + $0x10] sm:$0xff] }
  0x3b   :  { %586 = vmatpush3.msra.mxu0 %v299_v8  ;;  %v285_v23 = vld [vmem:[#allocation7 + $0x8] sm:$0xff]  ;;  %v284_v24 = vld [vmem:[#allocation7] sm:$0xff]  ;;  %v399_v25 = vld [vmem:[#allocation8 + $0x78] sm:$0xff] }
  0x3c   :  { %587 = vmatprep.subr.mxu0 %v298_v10  ;;  %v398_v26 = vld [vmem:[#allocation8 + $0x70] sm:$0xff]  ;;  %620 = vmatprep.subr.mxu1 %v399_v25  ;;  %v397_v27 = vld [vmem:[#allocation8 + $0x68] sm:$0xff]  ;;  %v396_v28 = vld [vmem:[#allocation8 + $0x60] sm:$0xff] }
  0x3d   :  { %588 = vmatpush3.msra.mxu0 %v298_v10  ;;  %621 = vmatpush3.msra.mxu1 %v399_v25  ;;  %v395_v29 = vld [vmem:[#allocation8 + $0x58] sm:$0xff]  ;;  %v394_v30 = vld [vmem:[#allocation8 + $0x50] sm:$0xff]  ;;  %v393_v31 = vld [vmem:[#allocation8 + $0x48] sm:$0xff] }
  0x3e   :  { %589 = vmatprep.subr.mxu0 %v297_v11  ;;  %622 = vmatprep.subr.mxu1 %v398_v26  ;;  %v392_v32 = vld [vmem:[#allocation8 + $0x40] sm:$0xff]  ;;  %v391_v33 = vld [vmem:[#allocation8 + $0x38] sm:$0xff]  ;;  %v390_v34 = vld [vmem:[#allocation8 + $0x30] sm:$0xff] }
  0x3f   :  { %590 = vmatpush3.msra.mxu0 %v297_v11  ;;  %623 = vmatpush3.msra.mxu1 %v398_v26  ;;  %v389_v35 = vld [vmem:[#allocation8 + $0x28] sm:$0xff]  ;;  %v388_v36 = vld [vmem:[#allocation8 + $0x20] sm:$0xff]  ;;  %v387_v48 = vld [vmem:[#allocation8 + $0x18] sm:$0xff] }
  0x40   :  { %591 = vmatprep.subr.mxu0 %v296_v12  ;;  %624 = vmatprep.subr.mxu1 %v397_v27  ;;  %v522_v40 = vld [vmem:[%s865_s4] ss:$0 sm:$0xff]  ;;  %v386_v49 = vld [vmem:[#allocation8 + $0x10] sm:$0xff]  ;;  %v385_v50 = vld [vmem:[#allocation8 + $0x8] sm:$0xff] }
  0x41   :  { %592 = vmatpush3.msra.mxu0 %v296_v12  ;;  %625 = vmatpush3.msra.mxu1 %v397_v27  ;;  %v384_v51 = vld [vmem:[#allocation8] sm:$0xff] }
  0x42   :  { %593 = vmatprep.subr.mxu0 %v295_v13  ;;  %626 = vmatprep.subr.mxu1 %v396_v28  ;;  %v523_v52 = vld [vmem:[%s867_s6] ss:$0 sm:$0xff] }
  0x43   :  { %594 = vmatpush3.msra.mxu0 %v295_v13  ;;  %627 = vmatpush3.msra.mxu1 %v396_v28  ;;  %v524_v60 = vld [vmem:[%s869_s8] ss:$0 sm:$0xff] }
  0x44   :  { %595 = vmatprep.subr.mxu0 %v294_v14  ;;  %628 = vmatprep.subr.mxu1 %v395_v29  ;;  %v525_v1 = vld [vmem:[%s870_s9] ss:$0 sm:$0xff] }
  0x45   :  { %596 = vmatpush3.msra.mxu0 %v294_v14  ;;  %629 = vmatpush3.msra.mxu1 %v395_v29  ;;  %v526_v5 = vld [vmem:[#allocation2] ss:$0 sm:$0xff] }
  0x46   :  { %597 = vmatprep.subr.mxu0 %v293_v15  ;;  %630 = vmatprep.subr.mxu1 %v394_v30 }
  0x47   :  { %598 = vmatpush3.msra.mxu0 %v293_v15  ;;  %631 = vmatpush3.msra.mxu1 %v394_v30 }
  0x48   :  { %599 = vmatprep.subr.mxu0 %v292_v16  ;;  %632 = vmatprep.subr.mxu1 %v393_v31 }
  0x49   :  { %600 = vmatpush3.msra.mxu0 %v292_v16  ;;  %633 = vmatpush3.msra.mxu1 %v393_v31 }
  0x4a   :  { %601 = vmatprep.subr.mxu0 %v291_v17  ;;  %634 = vmatprep.subr.mxu1 %v392_v32 }
  0x4b   :  { %602 = vmatpush3.msra.mxu0 %v291_v17  ;;  %635 = vmatpush3.msra.mxu1 %v392_v32 }
  0x4c   :  { %603 = vmatprep.subr.mxu0 %v290_v18  ;;  %636 = vmatprep.subr.mxu1 %v391_v33 }
  0x4d   :  { %604 = vmatpush3.msra.mxu0 %v290_v18  ;;  %637 = vmatpush3.msra.mxu1 %v391_v33 }
  0x4e   :  { %605 = vmatprep.subr.mxu0 %v289_v19  ;;  %638 = vmatprep.subr.mxu1 %v390_v34 }
  0x4f   :  { %606 = vmatpush3.msra.mxu0 %v289_v19  ;;  %639 = vmatpush3.msra.mxu1 %v390_v34 }
  0x50   :  { %607 = vmatprep.subr.mxu0 %v288_v20  ;;  %640 = vmatprep.subr.mxu1 %v389_v35 }
  0x51   :  { %608 = vmatpush3.msra.mxu0 %v288_v20  ;;  %641 = vmatpush3.msra.mxu1 %v389_v35 }
  0x52   :  { %609 = vmatprep.subr.mxu0 %v287_v21  ;;  %642 = vmatprep.subr.mxu1 %v388_v36 }
  0x53   :  { %610 = vmatpush3.msra.mxu0 %v287_v21  ;;  %643 = vmatpush3.msra.mxu1 %v388_v36 }
  0x54   :  { %611 = vmatprep.subr.mxu0 %v286_v22  ;;  %644 = vmatprep.subr.mxu1 %v387_v48 }
  0x55   :  { %612 = vmatpush3.msra.mxu0 %v286_v22  ;;  %645 = vmatpush3.msra.mxu1 %v387_v48 }
  0x56   :  { %613 = vmatprep.subr.mxu0 %v285_v23  ;;  %646 = vmatprep.subr.mxu1 %v386_v49 }
  0x57   :  { %614 = vmatpush3.msra.mxu0 %v285_v23  ;;  %647 = vmatpush3.msra.mxu1 %v386_v49 }
  0x58   :  { %615 = vmatprep.subr.mxu0 %v284_v24  ;;  %648 = vmatprep.subr.mxu1 %v385_v50 }
  0x59   :  { %616 = vmatpush3.msra.mxu0 %v284_v24  ;;  %649 = vmatpush3.msra.mxu1 %v385_v50 }
  0x5a   :  { %650 = vmatprep.subr.mxu1 %v384_v51 }
  0x5b   :  { %651 = vmatpush3.msra.mxu1 %v384_v51 }
  0xf8   :  { %v575_v37 = vpop.f32.mrf.mxu0 }
  0xfa   :  { %v584_v38 = vpop.f32.mrf.mxu1  ;;  %v178_v41 = vpop.f32.mrf.mxu0 }
  0xfb   :  { %v270_v39 = vadd.f32 %v584_v38, %v575_v37 }
  0xfc   :  { %v264_v42 = vpop.f32.mrf.mxu1 }
  0xfd   :  { %v265_v43 = vadd.f32 %v264_v42, %v178_v41  ;;  %v281_v44 = vadd.f32 %v522_v40, %v270_v39 }
  0xff   :  { %v280_v45 = vadd.f32 %v522_v40, %v265_v43  ;;  %v283_v47 = vmax.f32 %v281_v44, 0.0 }
 0x101   :  { %v282_v46 = vmax.f32 %v280_v45, 0.0 }
 0x103   :  { %617 = vmatprep.mubr.f32.mxu0 %v282_v46 }
 0x104   :  { %618 = vmatmul.mubr.f32.vlgmr.msra.gmra.mxu0 %v283_v47 }
 0x1c4   :  { %v619_v53 = vpop.f32.mrf.mxu0 }
 0x1c5   :  { %v379_v54 = vadd.f32 %v619_v53, %v523_v52 }
 0x1c6   :  { %v373_v55 = vpop.f32.mrf.mxu0 }
 0x1c7   :  { %v374_v56 = vadd.f32 %v523_v52, %v373_v55  ;;  %v383_v58 = vmax.f32 %v379_v54, 0.0 }
 0x1c9   :  { %v382_v57 = vmax.f32 %v374_v56, 0.0 }
 0x1cb   :  { %652 = vmatprep.mubr.f32.mxu1 %v382_v57 }
 0x1cc   :  { %653 = vmatmul.mubr.f32.vlgmr.msra.gmra.mxu1 %v383_v58 }
 0x28c   :  { %v654_v59 = vpop.f32.mrf.mxu1 }
 0x28d   :  { %v479_v62 = vadd.f32 %v654_v59, %v524_v60 }
 0x28e   :  { %v473_v61 = vpop.f32.mrf.mxu1 }
 0x28f   :  { %v474_v63 = vadd.f32 %v524_v60, %v473_v61  ;;  %v483_v2 = vmax.f32 %v479_v62, 0.0 }
 0x291   :  { %v482_v0 = vmax.f32 %v474_v63, 0.0  ;;  %v492_v4 = vmul.f32 %v525_v1, %v483_v2 }
 0x293   :  { %v491_v3 = vmul.f32 %v525_v1, %v482_v0 }
 0x295   :  { %493 = vadd.xlane.f32.xlu0 %v491_v3 }
 0x299   :  { %495 = vadd.xlane.f32.xlu0 %v492_v4 }
 0x31e   :  { %v494_v6 = vpop.xlane.xlu0 %493 }
 0x31f   :  { %v504_v7 = vadd.f32 %v526_v5, %v494_v6 }
 0x321   :  { %507 = vst.msk [vmem:[%s872_s11] sm:$0xff] %vm506_vm4, %v504_v7 }
 0x322   :  { %v496_v8 = vpop.xlane.xlu0 %495 }
 0x323   :  { %v505_v9 = vadd.f32 %v526_v5, %v496_v8 }
 0x325   :  { %508 = vst.msk [vmem:[%s872_s11 + $0x8] sm:$0xff] %vm506_vm4, %v505_v9 }
 0x326   :  { %513 = vsyncpa [#allocation4], 1 }
 0x327   :  { %514 = vsyncpa [#allocation6], 1 }
 0x328   :  { %515 = vsyncpa [#allocation9], 1 }

</bundles_post_ra>
